<compile_context>
chip_gen: v7x
topology: tpu7x:2x2x1
jax: 0.10.0
libtpu: 0.0.40
codegen_flags: <defaults>
</compile_context>

<pallas_src>
import functools

import jax
import jax.numpy as jnp
from jax.experimental import pallas as pl
from jax.experimental.pallas import tpu as pltpu


# ----------------------------- Pallas kernel ------------------------------

def mean_concat_dense_kernel(af_ref, vf_ref,
                             w1a_ref, w1v_ref,
                             w2a_ref, w2v_ref,
                             w3a_ref, w3v_ref,
                             b1a_ref, b1v_ref,
                             b2a_ref, b2v_ref,
                             b3_ref,
                             out_ref):
    # Temporal pooling: the 1/T factor is folded into W1, so a sum suffices.
    # Accumulate in f32 regardless of the input dtype, then feed bf16 to MXU.
    a_sum = jnp.sum(af_ref[...].astype(jnp.float32), axis=1).astype(jnp.bfloat16)
    v_sum = jnp.sum(vf_ref[...].astype(jnp.float32), axis=1).astype(jnp.bfloat16)

    # Layer 1 (per branch, dense de-zeroed weights).
    ha = (jnp.dot(a_sum, w1a_ref[...], preferred_element_type=jnp.float32)
          + b1a_ref[...])
    hv = (jnp.dot(v_sum, w1v_ref[...], preferred_element_type=jnp.float32)
          + b1v_ref[...])
    ha = jnp.maximum(ha, 0.0).astype(jnp.bfloat16)                 # (B, 512)
    hv = jnp.maximum(hv, 0.0).astype(jnp.bfloat16)                 # (B, 512)

    # Layer 2 (per branch).
    ha = (jnp.dot(ha, w2a_ref[...], preferred_element_type=jnp.float32)
          + b2a_ref[...])
    hv = (jnp.dot(hv, w2v_ref[...], preferred_element_type=jnp.float32)
          + b2v_ref[...])
    ha = jnp.maximum(ha, 0.0).astype(jnp.bfloat16)                 # (B, 128)
    hv = jnp.maximum(hv, 0.0).astype(jnp.bfloat16)                 # (B, 128)

    # Layer 3: two dots summed (0.5 averaging pre-folded into W3/b3),
    # lane-dense 128-wide output store.
    out_ref[...] = (jnp.dot(ha, w3a_ref[...], preferred_element_type=jnp.float32)
                    + jnp.dot(hv, w3v_ref[...], preferred_element_type=jnp.float32)
                    + b3_ref[...])


# ------------------------------ JAX wrapper --------------------------------

@functools.partial(jax.jit, static_argnames=("num_classes",))
def mean_concat_dense(audio_feat, video_feat, packed, *, num_classes):
    B = audio_feat.shape[0]
    da = audio_feat.shape[-1]
    dv = video_feat.shape[-1]
    c_pad = packed["w3a"].shape[1]           # class dim padded to multiple of 128

    args = (
        audio_feat,            # native dtype; f32 accumulation happens in-kernel
        video_feat,
        packed["w1a"], packed["w1v"],        # (Da,512), (Dv,512)  bf16, 1/T folded
        packed["w2a"], packed["w2v"],        # (512,128) each      bf16
        packed["w3a"], packed["w3v"],        # (128,Cpad) each     bf16, 0.5 folded
        packed["b1a"], packed["b1v"],        # (1,512) f32
        packed["b2a"], packed["b2v"],        # (1,128) f32
        packed["b3"],                        # (1,Cpad) f32, 0.5 folded
    )

    # Dense (de-zeroed) cost estimate.
    flops = 2 * B * (da * 512 + dv * 512 + 2 * 512 * 128 + 2 * 128 * c_pad)
    bytes_accessed = (
        audio_feat.size * audio_feat.dtype.itemsize
        + video_feat.size * video_feat.dtype.itemsize
        + sum(packed[k].size * 2 for k in ("w1a", "w1v", "w2a", "w2v", "w3a", "w3v"))
        + sum(packed[k].size * 4 for k in ("b1a", "b1v", "b2a", "b2v", "b3"))
        + B * c_pad * 4)

    # Problem is tiny -> single grid point, every operand lives fully in VMEM.
    out = pl.pallas_call(
        mean_concat_dense_kernel,
        out_shape=jax.ShapeDtypeStruct((B, c_pad), jnp.float32),
        in_specs=[pl.BlockSpec(memory_space=pltpu.MemorySpace.VMEM)] * len(args),
        out_specs=pl.BlockSpec(memory_space=pltpu.MemorySpace.VMEM),
        cost_estimate=pl.CostEstimate(flops=flops, transcendentals=0,
                                      bytes_accessed=bytes_accessed),
    )(*args)
    return out[:, :num_classes]


# --------------------- parameter folding / packing -------------------------

def _fold_bn(w, b, gamma, beta, mean, var, eps=1e-5):
    """Fold eval-mode BatchNorm1d into the preceding Linear (exact)."""
    scale = gamma / jnp.sqrt(var + eps)
    w_f = w * scale[None, :]
    b_f = (b - mean) * scale + beta
    return w_f, b_f


def _pad_last(x, n):
    pad = n - x.shape[-1]
    if pad <= 0:
        return x
    cfg = [(0, 0)] * (x.ndim - 1) + [(0, pad)]
    return jnp.pad(x, cfg)


def pack_params(params, t_audio, t_video):
    """Pack the two BN-folded branches into dense bf16 slabs (done once)."""
    num_classes = params["a_w3"].shape[1]
    c_pad = max(128, ((num_classes + 127) // 128) * 128)   # lane-dense class dim

    w1a = params["a_w1"] / float(t_audio)   # fold temporal mean (1/T) into W1
    w1v = params["v_w1"] / float(t_video)

    w3a = _pad_last(0.5 * params["a_w3"], c_pad)            # fold final 0.5 avg
    w3v = _pad_last(0.5 * params["v_w3"], c_pad)
    b3 = _pad_last(0.5 * (params["a_b3"] + params["v_b3"]), c_pad)

    return {
        "w1a": w1a.astype(jnp.bfloat16),
        "w1v": w1v.astype(jnp.bfloat16),
        "w2a": params["a_w2"].astype(jnp.bfloat16),
        "w2v": params["v_w2"].astype(jnp.bfloat16),
        "w3a": w3a.astype(jnp.bfloat16),
        "w3v": w3v.astype(jnp.bfloat16),
        "b1a": params["a_b1"].reshape(1, -1).astype(jnp.float32),
        "b1v": params["v_b1"].reshape(1, -1).astype(jnp.float32),
        "b2a": params["a_b2"].reshape(1, -1).astype(jnp.float32),
        "b2v": params["v_b2"].reshape(1, -1).astype(jnp.float32),
        "b3": b3.reshape(1, -1).astype(jnp.float32),
    }


# ------------------------- deterministic parameters ------------------------

def make_params(key, audio_emb_dim, video_emb_dim, num_classes):
    """Builds Linear + BatchNorm params deterministically and folds BN."""
    ks = jax.random.split(key, 32)
    k = iter(ks)

    def linear(kw, kb, d_in, d_out):
        w = jax.random.normal(kw, (d_in, d_out), jnp.float32) * (1.0 / jnp.sqrt(d_in))
        b = jax.random.normal(kb, (d_out,), jnp.float32) * 0.01
        return w, b

    def bn(kg, kb, km, kv, d):
        gamma = 1.0 + 0.1 * jax.random.normal(kg, (d,), jnp.float32)
        beta = 0.1 * jax.random.normal(kb, (d,), jnp.float32)
        mean = 0.1 * jax.random.normal(km, (d,), jnp.float32)
        var = 1.0 + 0.1 * jax.random.uniform(kv, (d,), jnp.float32)
        return gamma, beta, mean, var

    params = {}
    for prefix, d_in in (("a", audio_emb_dim), ("v", video_emb_dim)):
        w1, b1 = linear(next(k), next(k), d_in, 512)
        g1, be1, m1, v1 = bn(next(k), next(k), next(k), next(k), 512)
        w1, b1 = _fold_bn(w1, b1, g1, be1, m1, v1)

        w2, b2 = linear(next(k), next(k), 512, 128)
        g2, be2, m2, v2 = bn(next(k), next(k), next(k), next(k), 128)
        w2, b2 = _fold_bn(w2, b2, g2, be2, m2, v2)

        w3, b3 = linear(next(k), next(k), 128, num_classes)

        params[f"{prefix}_w1"], params[f"{prefix}_b1"] = w1, b1
        params[f"{prefix}_w2"], params[f"{prefix}_b2"] = w2, b2
        params[f"{prefix}_w3"], params[f"{prefix}_b3"] = w3, b3
    return params


# ------------------------------- reference ---------------------------------

def reference(audio_feat, video_feat, params):
    """Pure-JAX f32 reference over the per-branch (BN-folded) parameters."""
    def branch(x, pre):
        h = x @ params[f"{pre}_w1"] + params[f"{pre}_b1"]
        h = jnp.maximum(h, 0.0)
        h = h @ params[f"{pre}_w2"] + params[f"{pre}_b2"]
        h = jnp.maximum(h, 0.0)
        return h @ params[f"{pre}_w3"] + params[f"{pre}_b3"]

    a = branch(audio_feat.mean(axis=1), "a")
    v = branch(video_feat.mean(axis=1), "v")
    return (a + v) / 2.0


# --------------------------------- main -------------------------------------

if __name__ == "__main__":
    B, T = 2, 8
    audio_emb_dim, video_emb_dim, num_classes = 32, 48, 10

    key = jax.random.PRNGKey(0)
    k_af, k_vf, k_p = jax.random.split(key, 3)

    audio_feat = jax.random.normal(k_af, (B, T, audio_emb_dim), jnp.float32)
    video_feat = jax.random.normal(k_vf, (B, T, video_emb_dim), jnp.float32)
    params = make_params(k_p, audio_emb_dim, video_emb_dim, num_classes)

    # Pack once (outside the per-call path): dense per-branch bf16 slabs,
    # 1/T and 0.5 folded, class dim padded to 128.
    packed = pack_params(params, t_audio=T, t_video=T)

    out = mean_concat_dense(audio_feat, video_feat, packed,
                            num_classes=num_classes)
    out = jax.block_until_ready(out)

    ref = reference(audio_feat, video_feat, params)
    assert out.shape == (B, num_classes)
    # bf16 weights/activations in the kernel vs f32 reference -> loosened tol.
    assert jnp.allclose(out, ref, atol=2e-2, rtol=2e-2), "mismatch vs reference"

    print("KERNEL_OK")
</pallas_src>

<mosaic_0001>
module attributes {stable_mosaic.version = 11 : i64} {
  func.func @mean_concat_dense_kernel(%arg0: memref<2x8x32xf32, #tpu.memory_space<vmem>>, %arg1: memref<2x8x48xf32, #tpu.memory_space<vmem>>, %arg2: memref<32x512xbf16, #tpu.memory_space<vmem>>, %arg3: memref<48x512xbf16, #tpu.memory_space<vmem>>, %arg4: memref<512x128xbf16, #tpu.memory_space<vmem>>, %arg5: memref<512x128xbf16, #tpu.memory_space<vmem>>, %arg6: memref<128x128xbf16, #tpu.memory_space<vmem>>, %arg7: memref<128x128xbf16, #tpu.memory_space<vmem>>, %arg8: memref<1x512xf32, #tpu.memory_space<vmem>>, %arg9: memref<1x512xf32, #tpu.memory_space<vmem>>, %arg10: memref<1x128xf32, #tpu.memory_space<vmem>>, %arg11: memref<1x128xf32, #tpu.memory_space<vmem>>, %arg12: memref<1x128xf32, #tpu.memory_space<vmem>>, %arg13: memref<2x128xf32, #tpu.memory_space<vmem>>) attributes {dimension_semantics = [], scalar_prefetch = 0 : i64, scratch_operands = 0 : i64, tpu.core_type = #tpu.core_type<tc>} {
    %c0 = arith.constant 0 : index
    %c0_0 = arith.constant 0 : index
    %c0_1 = arith.constant 0 : index
    %0 = vector.load %arg0[%c0, %c0_0, %c0_1] : memref<2x8x32xf32, #tpu.memory_space<vmem>>, vector<2x8x32xf32>
    %cst = arith.constant dense<0.000000e+00> : vector<2x32xf32>
    %1 = vector.multi_reduction <add>, %0, %cst [1] : vector<2x8x32xf32> to vector<2x32xf32>
    %2 = arith.truncf %1 : vector<2x32xf32> to vector<2x32xbf16>
    %c0_2 = arith.constant 0 : index
    %c0_3 = arith.constant 0 : index
    %c0_4 = arith.constant 0 : index
    %3 = vector.load %arg1[%c0_2, %c0_3, %c0_4] : memref<2x8x48xf32, #tpu.memory_space<vmem>>, vector<2x8x48xf32>
    %cst_5 = arith.constant dense<0.000000e+00> : vector<2x48xf32>
    %4 = vector.multi_reduction <add>, %3, %cst_5 [1] : vector<2x8x48xf32> to vector<2x48xf32>
    %5 = arith.truncf %4 : vector<2x48xf32> to vector<2x48xbf16>
    %c0_6 = arith.constant 0 : index
    %c0_7 = arith.constant 0 : index
    %6 = vector.load %arg2[%c0_6, %c0_7] : memref<32x512xbf16, #tpu.memory_space<vmem>>, vector<32x512xbf16>
    %cst_8 = arith.constant dense<0.000000e+00> : vector<2x512xf32>
    %7 = tpu.matmul %2, %6, %cst_8 {dimension_numbers = #tpu.dot_dimension_numbers<[1], [0], [0], [1], [0, 0, 1, 1], [], []>} : vector<2x32xbf16>, vector<32x512xbf16>, vector<2x512xf32> -> vector<2x512xf32>
    %c0_9 = arith.constant 0 : index
    %c0_10 = arith.constant 0 : index
    %8 = vector.load %arg8[%c0_9, %c0_10] : memref<1x512xf32, #tpu.memory_space<vmem>>, vector<1x512xf32>
    %9 = vector.broadcast %8 : vector<1x512xf32> to vector<2x512xf32>
    %10 = arith.addf %7, %9 : vector<2x512xf32>
    %c0_11 = arith.constant 0 : index
    %c0_12 = arith.constant 0 : index
    %11 = vector.load %arg3[%c0_11, %c0_12] : memref<48x512xbf16, #tpu.memory_space<vmem>>, vector<48x512xbf16>
    %cst_13 = arith.constant dense<0.000000e+00> : vector<2x512xf32>
    %12 = tpu.matmul %5, %11, %cst_13 {dimension_numbers = #tpu.dot_dimension_numbers<[1], [0], [0], [1], [0, 0, 1, 1], [], []>} : vector<2x48xbf16>, vector<48x512xbf16>, vector<2x512xf32> -> vector<2x512xf32>
    %c0_14 = arith.constant 0 : index
    %c0_15 = arith.constant 0 : index
    %13 = vector.load %arg9[%c0_14, %c0_15] : memref<1x512xf32, #tpu.memory_space<vmem>>, vector<1x512xf32>
    %14 = vector.broadcast %13 : vector<1x512xf32> to vector<2x512xf32>
    %15 = arith.addf %12, %14 : vector<2x512xf32>
    %cst_16 = arith.constant 0.000000e+00 : f32
    %16 = vector.broadcast %cst_16 : f32 to vector<2x512xf32>
    %17 = arith.maximumf %10, %16 : vector<2x512xf32>
    %18 = arith.truncf %17 : vector<2x512xf32> to vector<2x512xbf16>
    %cst_17 = arith.constant 0.000000e+00 : f32
    %19 = vector.broadcast %cst_17 : f32 to vector<2x512xf32>
    %20 = arith.maximumf %15, %19 : vector<2x512xf32>
    %21 = arith.truncf %20 : vector<2x512xf32> to vector<2x512xbf16>
    %c0_18 = arith.constant 0 : index
    %c0_19 = arith.constant 0 : index
    %22 = vector.load %arg4[%c0_18, %c0_19] : memref<512x128xbf16, #tpu.memory_space<vmem>>, vector<512x128xbf16>
    %cst_20 = arith.constant dense<0.000000e+00> : vector<2x128xf32>
    %23 = tpu.matmul %18, %22, %cst_20 {dimension_numbers = #tpu.dot_dimension_numbers<[1], [0], [0], [1], [0, 0, 1, 1], [], []>} : vector<2x512xbf16>, vector<512x128xbf16>, vector<2x128xf32> -> vector<2x128xf32>
    %c0_21 = arith.constant 0 : index
    %c0_22 = arith.constant 0 : index
    %24 = vector.load %arg10[%c0_21, %c0_22] : memref<1x128xf32, #tpu.memory_space<vmem>>, vector<1x128xf32>
    %25 = vector.broadcast %24 : vector<1x128xf32> to vector<2x128xf32>
    %26 = arith.addf %23, %25 : vector<2x128xf32>
    %c0_23 = arith.constant 0 : index
    %c0_24 = arith.constant 0 : index
    %27 = vector.load %arg5[%c0_23, %c0_24] : memref<512x128xbf16, #tpu.memory_space<vmem>>, vector<512x128xbf16>
    %cst_25 = arith.constant dense<0.000000e+00> : vector<2x128xf32>
    %28 = tpu.matmul %21, %27, %cst_25 {dimension_numbers = #tpu.dot_dimension_numbers<[1], [0], [0], [1], [0, 0, 1, 1], [], []>} : vector<2x512xbf16>, vector<512x128xbf16>, vector<2x128xf32> -> vector<2x128xf32>
    %c0_26 = arith.constant 0 : index
    %c0_27 = arith.constant 0 : index
    %29 = vector.load %arg11[%c0_26, %c0_27] : memref<1x128xf32, #tpu.memory_space<vmem>>, vector<1x128xf32>
    %30 = vector.broadcast %29 : vector<1x128xf32> to vector<2x128xf32>
    %31 = arith.addf %28, %30 : vector<2x128xf32>
    %cst_28 = arith.constant 0.000000e+00 : f32
    %32 = vector.broadcast %cst_28 : f32 to vector<2x128xf32>
    %33 = arith.maximumf %26, %32 : vector<2x128xf32>
    %34 = arith.truncf %33 : vector<2x128xf32> to vector<2x128xbf16>
    %cst_29 = arith.constant 0.000000e+00 : f32
    %35 = vector.broadcast %cst_29 : f32 to vector<2x128xf32>
    %36 = arith.maximumf %31, %35 : vector<2x128xf32>
    %37 = arith.truncf %36 : vector<2x128xf32> to vector<2x128xbf16>
    %c0_30 = arith.constant 0 : index
    %c0_31 = arith.constant 0 : index
    %38 = vector.load %arg6[%c0_30, %c0_31] : memref<128x128xbf16, #tpu.memory_space<vmem>>, vector<128x128xbf16>
    %cst_32 = arith.constant dense<0.000000e+00> : vector<2x128xf32>
    %39 = tpu.matmul %34, %38, %cst_32 {dimension_numbers = #tpu.dot_dimension_numbers<[1], [0], [0], [1], [0, 0, 1, 1], [], []>} : vector<2x128xbf16>, vector<128x128xbf16>, vector<2x128xf32> -> vector<2x128xf32>
    %c0_33 = arith.constant 0 : index
    %c0_34 = arith.constant 0 : index
    %40 = vector.load %arg7[%c0_33, %c0_34] : memref<128x128xbf16, #tpu.memory_space<vmem>>, vector<128x128xbf16>
    %cst_35 = arith.constant dense<0.000000e+00> : vector<2x128xf32>
    %41 = tpu.matmul %37, %40, %cst_35 {dimension_numbers = #tpu.dot_dimension_numbers<[1], [0], [0], [1], [0, 0, 1, 1], [], []>} : vector<2x128xbf16>, vector<128x128xbf16>, vector<2x128xf32> -> vector<2x128xf32>
    %42 = arith.addf %39, %41 : vector<2x128xf32>
    %c0_36 = arith.constant 0 : index
    %c0_37 = arith.constant 0 : index
    %43 = vector.load %arg12[%c0_36, %c0_37] : memref<1x128xf32, #tpu.memory_space<vmem>>, vector<1x128xf32>
    %44 = vector.broadcast %43 : vector<1x128xf32> to vector<2x128xf32>
    %45 = arith.addf %42, %44 : vector<2x128xf32>
    %c0_38 = arith.constant 0 : index
    %c0_39 = arith.constant 0 : index
    %46 = vector.load %arg13[%c0_38, %c0_39] : memref<2x128xf32, #tpu.memory_space<vmem>>, vector<2x128xf32>
    tpu.vector_store %arg13[%c0_38, %c0_39], %45 {strides = array<i32>} : memref<2x128xf32, #tpu.memory_space<vmem>>, vector<2x128xf32>,
    return
  }
}

</mosaic_0001>

<bundles_post_ra>
// kernel: mean_concat_dense.1
= control target key start
LH: loop header
LB: loop body
LE: loop exit
PB: predicated region body
PF: predicated region fallthrough
CT: control target
= control target key end

     0   :  { %18 = vsyncpa [#allocation3], 0  ;;  %s2357_s0 = inlined_call_operand.hbm [shape: f32[2,8,32], index: 0, kind: input, shape index: {}]   ;;  %s2358_s1 = inlined_call_operand.hbm [shape: f32[2,8,48], index: 1, kind: input, shape index: {}]   ;;  %s2359_s2 = inlined_call_operand.hbm [shape: bf16[32,512], index: 2, kind: input, shape index: {}]   ;;  %s2360_s3 = inlined_call_operand.hbm [shape: bf16[48,512], index: 3, kind: input, shape index: {}]   ;;  %s2361_s4 = inlined_call_operand.hbm [shape: bf16[512,128], index: 4, kind: input, shape index: {}]   ;;  %s2362_s5 = inlined_call_operand.hbm [shape: bf16[512,128], index: 5, kind: input, shape index: {}]   ;;  %s2363_s6 = inlined_call_operand.hbm [shape: bf16[128,128], index: 6, kind: input, shape index: {}]   ;;  %s2364_s7 = inlined_call_operand.hbm [shape: bf16[128,128], index: 7, kind: input, shape index: {}]   ;;  %s2365_s8 = inlined_call_operand.vmem [shape: f32[1,512], index: 8, kind: input, shape index: {}]   ;;  %s2366_s9 = inlined_call_operand.vmem [shape: f32[1,512], index: 9, kind: input, shape index: {}]   ;;  %s2367_s10 = inlined_call_operand.vmem [shape: f32[1,128], index: 10, kind: input, shape index: {}]   ;;  %s2368_s11 = inlined_call_operand.vmem [shape: f32[1,128], index: 11, kind: input, shape index: {}]   ;;  %s2369_s12 = inlined_call_operand.vmem [shape: f32[1,128], index: 12, kind: input, shape index: {}]   ;;  %s2370_s13 = inlined_call_operand.hbm [shape: f32[2,128], index: 13, kind: output, shape index: {}]  }
   0x1   :  { %19 = vsyncpa [#allocation6], 0 }
   0x2   :  { %20 = vsyncpa [#allocation9], 0 }
   0x3   :  { %21 = vsyncpa [#allocation12], 0 }
   0x4   :  { %22 = vsyncpa [#allocation15], 0 }
   0x5   :  { %23 = vsyncpa [#allocation4], 0  ;;  %s2073_s25 = smov [#allocation5]   ;;  %s1863_s29 = scalar_lea.hbm %s2358_s1, 256 }
   0x6   :  { %s41_s26 = sshll.u32 %s2073_s25, 4  ;;  %p1864_p0 = scmp.ne.s32.totalorder %s2358_s1, %s1863_s29  ;;  %s42_s26 = int_to_ptr.vmem [resolvable:$true] %s41_s26 }
   0x7   :  { %p1867_p1 = scmp.lt.u32.totalorder %s1863_s29, %s2358_s1 }
   0x9   :  { %p1869_p2 = pnand %p1867_p1, %p1864_p0 }
   0xb   :  { %1872 = shalt.err (!%p1869_p2)
}
   0xc   :  { %s1873_s17 = scalar_lea.vmem %s42_s26, 256  ;;  %p1878_p4 = scmp.lt.s32.totalorder %s42_s26, %s42_s26 }
   0xd   :  { %p1874_p3 = scmp.ne.s32.totalorder %s42_s26, %s1873_s17  ;;  %p1879_p5 = scmp.lt.s32.totalorder %s1873_s17, %s1873_s17 }
   0xf   :  { %p1880_p6 = por %p1879_p5, %p1878_p4 }
  0x11   :  { %p1881_p7 = pnand %p1880_p6, %p1874_p3 }
  0x13   :  { %1884 = shalt.err (!%p1881_p7)
}
  0x14   :  { %s2074_s18 = smov 128   ;;  %s2075_s19 = smov 8  }
  0x15   :  { %47 = dma.hbm_to_vmem [thread:$0]  %s2358_s1, 256, %s42_s26, [#allocation6], %s2074_s18, %s2074_s18, %s2075_s19  }
  0x16   :  { %s2076_s22 = smov [#allocation8]   ;;  %s1885_s27 = scalar_lea.hbm %s2360_s3, 1536 }
  0x17   :  { %s65_s23 = sshll.u32 %s2076_s22, 4  ;;  %p1886_p8 = scmp.ne.s32.totalorder %s2360_s3, %s1885_s27  ;;  %s66_s23 = int_to_ptr.vmem [resolvable:$true] %s65_s23 }
  0x18   :  { %p1889_p9 = scmp.lt.u32.totalorder %s1885_s27, %s2360_s3 }
  0x1a   :  { %p1891_p10 = pnand %p1889_p9, %p1886_p8 }
  0x1c   :  { %1894 = shalt.err (!%p1891_p10)
}
  0x1d   :  { %s1895_s15 = scalar_lea.vmem %s66_s23, 1536  ;;  %p1900_p12 = scmp.lt.s32.totalorder %s66_s23, %s66_s23 }
  0x1e   :  { %p1896_p11 = scmp.ne.s32.totalorder %s66_s23, %s1895_s15  ;;  %p1901_p13 = scmp.lt.s32.totalorder %s1895_s15, %s1895_s15 }
  0x20   :  { %p1902_p0 = por %p1901_p13, %p1900_p12 }
  0x22   :  { %p1903_p1 = pnand %p1902_p0, %p1896_p11 }
  0x24   :  { %1906 = shalt.err (!%p1903_p1)
}
  0x25   :  { %s2077_s1 = smov 256   ;;  %s2078_s26 = smov 16  }
  0x26   :  { %71 = dma.hbm_to_vmem [thread:$0]  %s2360_s3, 1536, %s66_s23, [#allocation9], %s2077_s1, %s2077_s1, %s2078_s26  }
  0x27   :  { %s2079_s20 = smov [#allocation11]   ;;  %s2080_s22 = smov [#allocation2]  }
  0x28   :  { %s89_s21 = sshll.u32 %s2079_s20, 4  ;;  %s29_s24 = sshll.u32 %s2080_s22, 4  ;;  %s90_s21 = int_to_ptr.vmem [resolvable:$true] %s89_s21  ;;  %s2191_s24 = int_to_ptr.vmem [resolvable:$true] %s29_s24 }
  0x29   :  { %s1907_s28 = scalar_lea.hbm %s2362_s5, 4096 }
  0x2a   :  { %p1908_p2 = scmp.ne.s32.totalorder %s2362_s5, %s1907_s28  ;;  %p1911_p3 = scmp.lt.u32.totalorder %s1907_s28, %s2362_s5 }
  0x2c   :  { %p1913_p4 = pnand %p1911_p3, %p1908_p2 }
  0x2e   :  { %1916 = shalt.err (!%p1913_p4)
}
  0x2f   :  { %s1917_s3 = scalar_lea.vmem %s90_s21, 4096  ;;  %p1922_p6 = scmp.lt.s32.totalorder %s90_s21, %s90_s21 }
  0x30   :  { %p1918_p5 = scmp.ne.s32.totalorder %s90_s21, %s1917_s3  ;;  %p1923_p7 = scmp.lt.s32.totalorder %s1917_s3, %s1917_s3 }
  0x32   :  { %p1924_p8 = por %p1923_p7, %p1922_p6 }
  0x34   :  { %p1925_p9 = pnand %p1924_p8, %p1918_p5 }
  0x36   :  { %1928 = shalt.err (!%p1925_p9)
}
  0x37   :  { %s2081_s23 = smov 64   ;;  %s2082_s16 = smov 4  }
  0x38   :  { %95 = dma.hbm_to_vmem [thread:$0]  %s2362_s5, 4096, %s90_s21, [#allocation12], %s2081_s23, %s2081_s23, %s2082_s16  }
  0x39   :  { %s1929_s27 = scalar_lea.hbm %s2357_s0, 256 }
  0x3a   :  { %p1930_p10 = scmp.ne.s32.totalorder %s2357_s0, %s1929_s27  ;;  %p1933_p11 = scmp.lt.u32.totalorder %s1929_s27, %s2357_s0 }
  0x3c   :  { %p1935_p12 = pnand %p1933_p11, %p1930_p10 }
  0x3e   :  { %1938 = shalt.err (!%p1935_p12)
}
  0x3f   :  { %s1939_s15 = scalar_lea.vmem %s2191_s24, 256  ;;  %p1944_p0 = scmp.lt.s32.totalorder %s2191_s24, %s2191_s24 }
  0x40   :  { %p1940_p13 = scmp.ne.s32.totalorder %s2191_s24, %s1939_s15  ;;  %p1945_p1 = scmp.lt.s32.totalorder %s1939_s15, %s1939_s15 }
  0x42   :  { %p1946_p2 = por %p1945_p1, %p1944_p0 }
  0x44   :  { %p1947_p3 = pnand %p1946_p2, %p1940_p13 }
  0x46   :  { %1950 = shalt.err (!%p1947_p3)
}
  0x47   :  { %35 = dma.hbm_to_vmem [thread:$0]  %s2357_s0, 256, %s2191_s24, [#allocation3], %s2074_s18, %s2074_s18, %s2075_s19  }
  0x48   :  { %s2083_s3 = smov [#allocation7]   ;;  %s2084_s20 = smov [#allocation10]  }
  0x49   :  { %s53_s17 = sshll.u32 %s2083_s3, 4  ;;  %s77_s22 = sshll.u32 %s2084_s20, 4  ;;  %s54_s17 = int_to_ptr.vmem [resolvable:$true] %s53_s17  ;;  %s2228_s22 = int_to_ptr.vmem [resolvable:$true] %s77_s22 }
  0x4a   :  { %s1951_s28 = scalar_lea.hbm %s2359_s2, 1024 }
  0x4b   :  { %p1952_p4 = scmp.ne.s32.totalorder %s2359_s2, %s1951_s28  ;;  %p1955_p5 = scmp.lt.u32.totalorder %s1951_s28, %s2359_s2 }
  0x4d   :  { %p1957_p6 = pnand %p1955_p5, %p1952_p4 }
  0x4f   :  { %1960 = shalt.err (!%p1957_p6)
}
  0x50   :  { %s1961_s0 = scalar_lea.vmem %s54_s17, 1024  ;;  %p1966_p8 = scmp.lt.s32.totalorder %s54_s17, %s54_s17 }
  0x51   :  { %p1962_p7 = scmp.ne.s32.totalorder %s54_s17, %s1961_s0  ;;  %p1967_p9 = scmp.lt.s32.totalorder %s1961_s0, %s1961_s0 }
  0x53   :  { %p1968_p10 = por %p1967_p9, %p1966_p8 }
  0x55   :  { %p1969_p11 = pnand %p1968_p10, %p1962_p7 }
  0x57   :  { %1972 = shalt.err (!%p1969_p11)
}
  0x58   :  { %59 = dma.hbm_to_vmem [thread:$0]  %s2359_s2, 1024, %s54_s17, [#allocation6], %s2077_s1, %s2077_s1, %s2078_s26  }
  0x59   :  { %s1973_s21 = scalar_lea.hbm %s2361_s4, 4096 }
  0x5a   :  { %p1974_p12 = scmp.ne.s32.totalorder %s2361_s4, %s1973_s21  ;;  %p1977_p13 = scmp.lt.u32.totalorder %s1973_s21, %s2361_s4 }
  0x5c   :  { %p1979_p0 = pnand %p1977_p13, %p1974_p12 }
  0x5e   :  { %1982 = shalt.err (!%p1979_p0)
}
  0x5f   :  { %s1983_s28 = scalar_lea.vmem %s2228_s22, 4096  ;;  %p1988_p2 = scmp.lt.s32.totalorder %s2228_s22, %s2228_s22 }
  0x60   :  { %p1984_p1 = scmp.ne.s32.totalorder %s2228_s22, %s1983_s28  ;;  %p1989_p3 = scmp.lt.s32.totalorder %s1983_s28, %s1983_s28 }
  0x62   :  { %p1990_p4 = por %p1989_p3, %p1988_p2 }
  0x64   :  { %p1991_p5 = pnand %p1990_p4, %p1984_p1 }
  0x66   :  { %1994 = shalt.err (!%p1991_p5)
}
  0x67   :  { %83 = dma.hbm_to_vmem [thread:$0]  %s2361_s4, 4096, %s2228_s22, [#allocation9], %s2081_s23, %s2081_s23, %s2082_s16  }
  0x68   :  { %s2085_s26 = smov [#allocation13]   ;;  %s2086_s29 = smov [#allocation14]  }
  0x69   :  { %s101_s17 = sshll.u32 %s2085_s26, 4  ;;  %s113_s30 = sshll.u32 %s2086_s29, 4  ;;  %s102_s17 = int_to_ptr.vmem [resolvable:$true] %s101_s17  ;;  %s2265_s30 = int_to_ptr.vmem [resolvable:$true] %s113_s30 }
  0x6a   :  { %s1995_s0 = scalar_lea.hbm %s2363_s6, 1024 }
  0x6b   :  { %p1996_p6 = scmp.ne.s32.totalorder %s2363_s6, %s1995_s0  ;;  %p1999_p7 = scmp.lt.u32.totalorder %s1995_s0, %s2363_s6 }
  0x6d   :  { %p2001_p8 = pnand %p1999_p7, %p1996_p6 }
  0x6f   :  { %2004 = shalt.err (!%p2001_p8)
}
  0x70   :  { %s2005_s4 = scalar_lea.vmem %s102_s17, 1024  ;;  %p2010_p10 = scmp.lt.s32.totalorder %s102_s17, %s102_s17 }
  0x71   :  { %p2006_p9 = scmp.ne.s32.totalorder %s102_s17, %s2005_s4  ;;  %p2011_p11 = scmp.lt.s32.totalorder %s2005_s4, %s2005_s4 }
  0x73   :  { %p2012_p12 = por %p2011_p11, %p2010_p10 }
  0x75   :  { %p2013_p13 = pnand %p2012_p12, %p2006_p9 }
  0x77   :  { %2016 = shalt.err (!%p2013_p13)
}
  0x78   :  { %107 = dma.hbm_to_vmem [thread:$0]  %s2363_s6, 1024, %s102_s17, [#allocation12], %s2081_s23, %s2081_s23, %s2082_s16  }
  0x79   :  { %s2017_s25 = scalar_lea.hbm %s2364_s7, 1024 }
  0x7a   :  { %p2018_p0 = scmp.ne.s32.totalorder %s2364_s7, %s2017_s25  ;;  %p2021_p1 = scmp.lt.u32.totalorder %s2017_s25, %s2364_s7 }
  0x7c   :  { %p2023_p2 = pnand %p2021_p1, %p2018_p0 }
  0x7e   :  { %2026 = shalt.err (!%p2023_p2)
}
  0x7f   :  { %s2027_s26 = scalar_lea.vmem %s2265_s30, 1024  ;;  %p2032_p4 = scmp.lt.s32.totalorder %s2265_s30, %s2265_s30 }
  0x80   :  { %p2028_p3 = scmp.ne.s32.totalorder %s2265_s30, %s2027_s26  ;;  %p2033_p5 = scmp.lt.s32.totalorder %s2027_s26, %s2027_s26 }
  0x82   :  { %p2034_p6 = por %p2033_p5, %p2032_p4 }
  0x84   :  { %p2035_p7 = pnand %p2034_p6, %p2028_p3 }
  0x86   :  { %2038 = shalt.err (!%p2035_p7)
}
  0x87   :  { %119 = dma.hbm_to_vmem [thread:$0]  %s2364_s7, 1024, %s2265_s30, [#allocation15], %s2081_s23, %s2081_s23, %s2082_s16  }
  0x88   :  { %2061 = dma.done.wait [#allocation3], 256  }
  0x89   :  { %2062 = vsyncadd [#allocation3], 4294967040 }
  0x8a   :  { %2063 = dma.done.wait [#allocation6], 1280  }
  0x8b   :  { %2064 = vsyncadd [#allocation6], 4294966016 }
  0x8c   :  { %2065 = dma.done.wait [#allocation9], 5632  }
  0x8d   :  { %2066 = vsyncadd [#allocation9], 4294961664 }
  0x8e   :  { %2067 = dma.done.wait [#allocation12], 5120  }
  0x8f   :  { %2068 = vsyncadd [#allocation12], 4294962176 }
  0x90   :  { %2069 = dma.done.wait [#allocation15], 1024  }
  0x91   :  { %2070 = vsyncadd [#allocation15], 4294966272  ;;  %v2087_v0 = vmov 0   ;;  %v1753_v1 = vld [vmem:[#allocation7 + $0x4] ss:$16 sps:$4 sm:$0xff]   ;;  %vm157_vm0 = vcmask 261120  }
  0x92   :  { %305 = vmatprep.mubr.bf16.mxu0 %v2087_v0  ;;  %346 = vmatprep.mubr.bf16.mxu1 %v2087_v0  ;;  %v1755_v2 = vld [vmem:[#allocation7 + $0xc] ss:$16 sps:$4 sm:$0xff]   ;;  %v1757_v3 = vld [vmem:[#allocation7] ss:$16 sps:$4 sm:$0xff]   ;;  %v1758_v4 = vld [vmem:[#allocation7 + $0x8] ss:$16 sps:$4 sm:$0xff]  }
  0x93   :  { %273 = vmatprep.subr.bf16.mxu0 %v1753_v1  ;;  %314 = vmatprep.subr.bf16.mxu1 %v1755_v2  ;;  %v1759_v5 = vld [vmem:[#allocation7 + $0x24] ss:$16 sps:$4 sm:$0xff]   ;;  %v1761_v6 = vld [vmem:[#allocation7 + $0x2c] ss:$16 sps:$4 sm:$0xff]   ;;  %v1763_v7 = vld [vmem:[#allocation7 + $0x20] ss:$16 sps:$4 sm:$0xff]  }
  0x94   :  { %274 = vmatpush1.bf16.msra.mxu0 %v1757_v3  ;;  %315 = vmatpush1.bf16.msra.mxu1 %v1758_v4  ;;  %v1764_v8 = vld [vmem:[#allocation7 + $0x28] ss:$16 sps:$4 sm:$0xff]   ;;  %v155_v9 = vld [vmem:[#allocation2] sm:$0xff]  ;;  %v1770_v16 = vld [vmem:[#allocation8 + $0xc] ss:$16 sps:$4 sm:$0xff]   ;;  %vm176_vm1 = vcmask 392192  }
  0x95   :  { %275 = vmatprep.subr.bf16.mxu0 %v1759_v5  ;;  %v156_v10 = vld [vmem:[#allocation2 + $0x8] sm:$0xff]  ;;  %316 = vmatprep.subr.bf16.mxu1 %v1761_v6  ;;  %v158_v11 = vsel %vm157_vm0, %v155_v9, 0.0  ;;  %v1767_v15 = vld [vmem:[#allocation8 + $0x4] ss:$16 sps:$4 sm:$0xff]   ;;  %v175_v24 = vld [vmem:[#allocation5 + $0x8] sm:$0xff]  ;;  %vm227_vm2 = vcmask 1041409  }
  0x96   :  { %v165_v12 = vsel %vm157_vm0, %v156_v10, 0.0  ;;  %v159_v13 = vrot.slane %v158_v11, 4  ;;  %v174_v23 = vld [vmem:[#allocation5] sm:$0xff]  ;;  %v184_v28 = vsel %vm176_vm1, %v175_v24, 0.0  ;;  %v1768_v42 = vld [vmem:[#allocation8 + $0x8] ss:$16 sps:$4 sm:$0xff]  }
  0x97   :  { %v166_v14 = vrot.slane %v165_v12, 4  ;;  %v177_v27 = vsel %vm176_vm1, %v174_v23, 0.0  ;;  %v185_v30 = vrot.slane %v184_v28, 4  ;;  %v1765_v41 = vld [vmem:[#allocation8] ss:$16 sps:$4 sm:$0xff]   ;;  %v1787_v6 = vld [vmem:[#allocation10 + $0x48] sm:$0xff]  }
  0x98   :  { %276 = vmatpush1.bf16.msra.mxu0 %v1763_v7  ;;  %317 = vmatpush1.bf16.msra.mxu1 %v1764_v8  ;;  %v160_v17 = vadd.f32 %v159_v13, %v158_v11  ;;  %v178_v29 = vrot.slane %v177_v27, 4  ;;  %v1773_v46 = vld [vmem:[#allocation8 + $0x24] ss:$16 sps:$4 sm:$0xff]   ;;  %v1776_v48 = vld [vmem:[#allocation8 + $0x2c] ss:$16 sps:$4 sm:$0xff]   ;;  %vm2089_vm3 = vmmov 0  }
  0x99   :  { %v167_v18 = vadd.f32 %v166_v14, %v165_v12  ;;  %458 = vmatprep.subr.bf16.mxu0 %v1767_v15  ;;  %499 = vmatprep.subr.bf16.mxu1 %v1770_v16  ;;  %v186_v34 = vadd.f32 %v185_v30, %v184_v28  ;;  %v1771_v51 = vld [vmem:[#allocation8 + $0x20] ss:$16 sps:$4 sm:$0xff]   ;;  %v1774_v52 = vld [vmem:[#allocation8 + $0x28] ss:$16 sps:$4 sm:$0xff]   ;;  %v1779_v55 = vld [vmem:[#allocation8 + $0x44] ss:$16 sps:$4 sm:$0xff]  }
  0x9a   :  { %v161_v19 = vrot.slane %v160_v17, 2  ;;  %v179_v33 = vadd.f32 %v178_v29, %v177_v27  ;;  %v1782_v56 = vld [vmem:[#allocation8 + $0x4c] ss:$16 sps:$4 sm:$0xff]   ;;  %v1777_v59 = vld [vmem:[#allocation8 + $0x40] ss:$16 sps:$4 sm:$0xff]   ;;  %s2090_s15 = smov [#allocation16]  }
  0x9b   :  { %v168_v20 = vrot.slane %v167_v18, 2  ;;  %v187_v38 = vrot.slane %v186_v34, 2  ;;  %v1780_v60 = vld [vmem:[#allocation8 + $0x48] ss:$16 sps:$4 sm:$0xff]   ;;  %v1783_v63 = vld [vmem:[#allocation10 + $0x40] sm:$0xff]   ;;  %v1791_v9 = vld [vmem:[#allocation10 + $0x50] sm:$0xff]  }
  0x9c   :  { %v162_v21 = vadd.f32 %v161_v19, %v160_v17  ;;  %v180_v37 = vrot.slane %v179_v33, 2  ;;  %v1784_v2 = vld [vmem:[#allocation10 + $0xc0] sm:$0xff]   ;;  %v1789_v7 = vld [vmem:[#allocation10 + $0x8] sm:$0xff]   ;;  %v1792_v10 = vld [vmem:[#allocation10 + $0xd0] sm:$0xff]   ;;  %s1469_s0 = sshll.u32 %s2090_s15, 4  ;;  %s1470_s0 = int_to_ptr.vmem [resolvable:$true] %s1469_s0 }
  0x9d   :  { %v169_v22 = vadd.f32 %v168_v20, %v167_v18  ;;  %v188_v44 = vadd.f32 %v187_v38, %v186_v34  ;;  %v1785_v3 = vld [vmem:[#allocation10] sm:$0xff]   ;;  %v1790_v8 = vld [vmem:[#allocation10 + $0x88] sm:$0xff]   ;;  %v1793_v11 = vld [vmem:[#allocation10 + $0x10] sm:$0xff]   ;;  %s2039_s18 = scalar_lea.vmem %s1470_s0, 32  ;;  %p2044_p9 = scmp.lt.s32.totalorder %s1470_s0, %s1470_s0 }
  0x9e   :  { %v163_v25 = vrot.slane %v162_v21, 1  ;;  %v181_v43 = vadd.f32 %v180_v37, %v179_v33  ;;  %v1786_v5 = vld [vmem:[#allocation10 + $0x80] sm:$0xff]   ;;  %v1794_v12 = vld [vmem:[#allocation10 + $0x90] sm:$0xff]   ;;  %v1795_v13 = vld [vmem:[#allocation10 + $0x58] sm:$0xff]   ;;  %p2040_p8 = scmp.ne.s32.totalorder %s1470_s0, %s2039_s18  ;;  %p2045_p10 = scmp.lt.s32.totalorder %s2039_s18, %s2039_s18 }
  0x9f   :  { %v170_v26 = vrot.slane %v169_v22, 1  ;;  %v189_v50 = vrot.slane %v188_v44, 1  ;;  %v1796_v14 = vld [vmem:[#allocation10 + $0xd8] sm:$0xff]   ;;  %v1799_v17 = vld [vmem:[#allocation10 + $0x60] sm:$0xff]   ;;  %v1805_v23 = vld [vmem:[#allocation10 + $0x28] sm:$0xff]  }
  0xa0   :  { %v164_v31 = vadd.f32 %v163_v25, %v162_v21  ;;  %v182_v49 = vrot.slane %v181_v43, 1  ;;  %v1797_v15 = vld [vmem:[#allocation10 + $0x18] sm:$0xff]   ;;  %v1800_v18 = vld [vmem:[#allocation10 + $0xe0] sm:$0xff]   ;;  %v1803_v21 = vld [vmem:[#allocation10 + $0x68] sm:$0xff]   ;;  %p2046_p11 = por %p2045_p10, %p2044_p9 }
  0xa1   :  { %v171_v32 = vadd.f32 %v170_v26, %v169_v22  ;;  %v190_v54 = vadd.f32 %v189_v50, %v188_v44  ;;  %v1798_v16 = vld [vmem:[#allocation10 + $0x98] sm:$0xff]   ;;  %v1801_v19 = vld [vmem:[#allocation10 + $0x20] sm:$0xff]   ;;  %v1804_v22 = vld [vmem:[#allocation10 + $0xe8] sm:$0xff]  }
  0xa2   :  { %v172_v35 = vpack.c.bf16 %v164_v31, %v164_v31  ;;  %v183_v53 = vadd.f32 %v182_v49, %v181_v43  ;;  %v1802_v20 = vld [vmem:[#allocation10 + $0xa0] sm:$0xff]   ;;  %v1806_v24 = vld [vmem:[#allocation10 + $0xa8] sm:$0xff]   ;;  %v1807_v25 = vld [vmem:[#allocation10 + $0x70] sm:$0xff]   ;;  %p2047_p12 = pnand %p2046_p11, %p2040_p8 }
  0xa3   :  { %v173_v36 = vpack.c.bf16 %v171_v32, %v171_v32  ;;  %v192_v58 = vpack.c.bf16 %v190_v54, %v190_v54  ;;  %v1808_v26 = vld [vmem:[#allocation10 + $0xf0] sm:$0xff]   ;;  %v1811_v29 = vld [vmem:[#allocation10 + $0x78] sm:$0xff]   ;;  %v1815_v33 = vld [vmem:[#allocation11 + $0x40] sm:$0xff]  }
  0xa4   :  { %v225_v39 = vunpack.c.l.b16 %v172_v35  ;;  %v191_v57 = vpack.c.bf16 %v183_v53, %v183_v53  ;;  %v1809_v27 = vld [vmem:[#allocation10 + $0x30] sm:$0xff]   ;;  %v1812_v30 = vld [vmem:[#allocation10 + $0xf8] sm:$0xff]   ;;  %v1816_v34 = vld [vmem:[#allocation11 + $0xc0] sm:$0xff]   ;;  %v203_v35 = vlaneseq }
  0xa5   :  { %v226_v40 = vunpack.c.l.b16 %v173_v36  ;;  %v392_v62 = vunpack.c.l.b16 %v192_v58  ;;  %v1810_v28 = vld [vmem:[#allocation10 + $0xb0] sm:$0xff]   ;;  %v1813_v31 = vld [vmem:[#allocation10 + $0x38] sm:$0xff]  }
  0xa6   :  { %v391_v61 = vunpack.c.l.b16 %v191_v57  ;;  %v1814_v32 = vld [vmem:[#allocation10 + $0xb8] sm:$0xff]   ;;  %v2316_v36 = vshrl.u32 %v203_v35, 7  ;;  %v1833_v35 = vld [vmem:[#allocation11 + $0x20] sm:$0xff]  }
  0xa7   :  { %v228_v45 = vsel %vm227_vm2, %v226_v40, %v225_v39  ;;  %v201_v39 = vld [vmem:[%s2365_s8] sm:$0xf] }
  0xa8   :  { %v229_v47 = vpack.c.b16 %v228_v45, %v228_v45  ;;  %v393_v1 = vsel %vm227_vm2, %v392_v62, %v391_v61  ;;  %v205_v37 = vsub.s32 0, %v2316_v36  ;;  %v213_v38 = vsub.s32 2, %v2316_v36 }
  0xa9   :  { %v394_v4 = vpack.c.b16 %v393_v1, %v393_v1  ;;  %v209_v40 = vsub.s32 1, %v2316_v36 }
  0xaa   :  { %1490 = vmatmul.mubr.msk.bf16.vlgmr.msra.gmra.mrb[0].mxu0 %vm157_vm0, %v229_v47  ;;  %1491 = vmatmul.mubr.msk.bf16.vlgmr.msra.gmra.mrb[0].mxu1 %vm157_vm0, %v229_v47  ;;  %v214_v43 = vrot.slane %v201_v39, %v213_v38 }
  0xab   :  { %459 = vmatpush1.bf16.msra.mxu0 %v1765_v41  ;;  %500 = vmatpush1.bf16.msra.mxu1 %v1768_v42  ;;  %v217_v41 = vsub.s32 3, %v2316_v36  ;;  %v206_v42 = vrot.slane %v201_v39, %v205_v37  ;;  %v210_v44 = vrot.slane %v201_v39, %v209_v40  ;;  %v1846_v36 = vld [vmem:[#allocation11 + $0xb8] sm:$0xff]  }
  0xac   :  { %460 = vmatprep.subr.bf16.mxu0 %v1773_v46  ;;  %501 = vmatprep.subr.bf16.mxu1 %v1776_v48 }
  0xad   :  { %490 = vmatprep.mubr.bf16.mxu0 %v2087_v0  ;;  %531 = vmatprep.mubr.bf16.mxu1 %v2087_v0  ;;  %v1788_v0 = vld [vmem:[#allocation10 + $0xc8] sm:$0xff]   ;;  %v218_v45 = vrot.slane %v201_v39, %v217_v41  ;;  %v1834_v39 = vld [vmem:[#allocation11 + $0xa0] sm:$0xff]  }
  0xaf   :  { %461 = vmatpush1.bf16.msra.mxu0 %v1771_v51  ;;  %502 = vmatpush1.bf16.msra.mxu1 %v1774_v52 }
  0xb0   :  { %462 = vmatprep.subr.bf16.mxu0 %v1779_v55  ;;  %503 = vmatprep.subr.bf16.mxu1 %v1782_v56 }
  0xb3   :  { %463 = vmatpush1.bf16.msra.mxu0 %v1777_v59  ;;  %504 = vmatpush1.bf16.msra.mxu1 %v1780_v60 }
  0xb4   :  { %1589 = vmatprep.subr.bf16.mxu0 %v1783_v63  ;;  %1611 = vmatprep.subr.bf16.mxu1 %v1784_v2  ;;  %v1817_v2 = vld [vmem:[#allocation11] sm:$0xff]  }
  0xb6   :  { %1504 = vmatmul.mubr.msk.bf16.vlgmr.msra.gmra.mrb[4].mxu0 %vm176_vm1, %v394_v4  ;;  %1505 = vmatmul.mubr.msk.bf16.vlgmr.msra.gmra.mrb[4].mxu1 %vm176_vm1, %v394_v4 }
  0xb7   :  { %1590 = vmatpush3.bf16.msra.mxu0 %v1785_v3  ;;  %1612 = vmatpush3.bf16.msra.mxu1 %v1786_v5  ;;  %v1818_v3 = vld [vmem:[#allocation11 + $0x80] sm:$0xff]   ;;  %v1819_v5 = vld [vmem:[#allocation11 + $0x48] sm:$0xff]  }
  0xb8   :  { %1591 = vmatprep.subr.bf16.mxu0 %v1787_v6  ;;  %1613 = vmatprep.subr.bf16.mxu1 %v1788_v0  ;;  %v1820_v6 = vld [vmem:[#allocation11 + $0xc8] sm:$0xff]   ;;  %v367_v0 = vld [vmem:[%s2366_s9] sm:$0xf] }
  0xbb   :  { %1592 = vmatpush3.bf16.msra.mxu0 %v1789_v7  ;;  %1614 = vmatpush3.bf16.msra.mxu1 %v1790_v8  ;;  %v1821_v7 = vld [vmem:[#allocation11 + $0x8] sm:$0xff]  }
  0xbc   :  { %1593 = vmatprep.subr.bf16.mxu0 %v1791_v9  ;;  %1615 = vmatprep.subr.bf16.mxu1 %v1792_v10  ;;  %v1822_v8 = vld [vmem:[#allocation11 + $0x88] sm:$0xff]   ;;  %v376_v9 = vrot.slane %v367_v0, %v209_v40  ;;  %v384_v10 = vrot.slane %v367_v0, %v217_v41 }
  0xbd   :  { %v1835_v40 = vld [vmem:[#allocation11 + $0x68] sm:$0xff]  }
  0xbe   :  { %v1836_v41 = vld [vmem:[#allocation11 + $0xe8] sm:$0xff]  }
  0xbf   :  { %1594 = vmatpush3.bf16.msra.mxu0 %v1793_v11  ;;  %1616 = vmatpush3.bf16.msra.mxu1 %v1794_v12  ;;  %v1823_v11 = vld [vmem:[#allocation11 + $0x50] sm:$0xff]  }
  0xc0   :  { %1595 = vmatprep.subr.bf16.mxu0 %v1795_v13  ;;  %1617 = vmatprep.subr.bf16.mxu1 %v1796_v14  ;;  %v1824_v12 = vld [vmem:[#allocation11 + $0xd0] sm:$0xff]  }
  0xc3   :  { %1596 = vmatpush3.bf16.msra.mxu0 %v1797_v15  ;;  %1618 = vmatpush3.bf16.msra.mxu1 %v1798_v16 }
  0xc4   :  { %1597 = vmatprep.subr.bf16.mxu0 %v1799_v17  ;;  %1619 = vmatprep.subr.bf16.mxu1 %v1800_v18  ;;  %v1825_v17 = vld [vmem:[#allocation11 + $0x10] sm:$0xff]  }
  0xc5   :  { %v1826_v18 = vld [vmem:[#allocation11 + $0x90] sm:$0xff]  }
  0xc7   :  { %1598 = vmatpush3.bf16.msra.mxu0 %v1801_v19  ;;  %1620 = vmatpush3.bf16.msra.mxu1 %v1802_v20 }
  0xc8   :  { %1599 = vmatprep.subr.bf16.mxu0 %v1803_v21  ;;  %1621 = vmatprep.subr.bf16.mxu1 %v1804_v22 }
  0xcb   :  { %1600 = vmatpush3.bf16.msra.mxu0 %v1805_v23  ;;  %1622 = vmatpush3.bf16.msra.mxu1 %v1806_v24  ;;  %v1827_v23 = vld [vmem:[#allocation11 + $0x58] sm:$0xff]  }
  0xcc   :  { %1601 = vmatprep.subr.bf16.mxu0 %v1807_v25  ;;  %1623 = vmatprep.subr.bf16.mxu1 %v1808_v26  ;;  %v1828_v24 = vld [vmem:[#allocation11 + $0xd8] sm:$0xff]  }
  0xcf   :  { %1602 = vmatpush3.bf16.msra.mxu0 %v1809_v27  ;;  %1624 = vmatpush3.bf16.msra.mxu1 %v1810_v28 }
  0xd0   :  { %1603 = vmatprep.subr.bf16.mxu0 %v1811_v29  ;;  %1625 = vmatprep.subr.bf16.mxu1 %v1812_v30  ;;  %v1829_v29 = vld [vmem:[#allocation11 + $0x18] sm:$0xff]  }
  0xd1   :  { %v1830_v30 = vld [vmem:[#allocation11 + $0x98] sm:$0xff]  }
  0xd3   :  { %1604 = vmatpush3.bf16.msra.mxu0 %v1813_v31  ;;  %1626 = vmatpush3.bf16.msra.mxu1 %v1814_v32 }
  0xd4   :  { %1633 = vmatprep.subr.bf16.mxu0 %v1815_v33  ;;  %1655 = vmatprep.subr.bf16.mxu1 %v1816_v34  ;;  %v1831_v33 = vld [vmem:[#allocation11 + $0x60] sm:$0xff]  }
  0xd5   :  { %v1832_v34 = vld [vmem:[#allocation11 + $0xe0] sm:$0xff]  }
 0x17d   :  { %v307_v46 = vpop.f32.mrb[0].mxu0  ;;  %v348_v47 = vpop.f32.mrb[0].mxu1 }
 0x17e   :  { %v308_v48 = vadd.f32 %v307_v46, %v206_v42  ;;  %v349_v49 = vadd.f32 %v348_v47, %v214_v43  ;;  %v309_v50 = vpop.f32.mrb[1].mxu0  ;;  %v350_v51 = vpop.f32.mrb[1].mxu1  ;;  %v380_v42 = vrot.slane %v367_v0, %v213_v38  ;;  %v1837_v43 = vld [vmem:[#allocation11 + $0x28] sm:$0xff]   ;;  %v1839_v46 = vld [vmem:[#allocation11 + $0x70] sm:$0xff]   ;;  %v1843_v38 = vld [vmem:[#allocation11 + $0x78] sm:$0xff]  }
 0x17f   :  { %v310_v52 = vadd.f32 %v309_v50, %v210_v44  ;;  %v351_v53 = vadd.f32 %v350_v51, %v218_v45  ;;  %v311_v54 = vpop.f32.mrb[2].mxu0  ;;  %v352_v55 = vpop.f32.mrb[2].mxu1  ;;  %v1838_v44 = vld [vmem:[#allocation11 + $0xa8] sm:$0xff]   ;;  %v372_v45 = vrot.slane %v367_v0, %v205_v37  ;;  %v1840_v47 = vld [vmem:[#allocation11 + $0xf0] sm:$0xff]   ;;  %v1859_v0 = vld [vmem:[#allocation14 + $0x20] sm:$0xff]  }
 0x180   :  { %v540_v56 = vmax.f32 %v308_v48, 0.0  ;;  %v542_v57 = vmax.f32 %v349_v49, 0.0  ;;  %v312_v58 = vpop.f32.mrb[3].mxu0  ;;  %v353_v59 = vpop.f32.mrb[3].mxu1  ;;  %v1841_v49 = vld [vmem:[#allocation11 + $0x30] sm:$0xff]   ;;  %v1845_v54 = vld [vmem:[#allocation11 + $0x38] sm:$0xff]  }
 0x181   :  { %v541_v60 = vmax.f32 %v310_v52, 0.0  ;;  %v543_v61 = vmax.f32 %v351_v53, 0.0  ;;  %v1842_v50 = vld [vmem:[#allocation11 + $0xb0] sm:$0xff]   ;;  %v1844_v52 = vld [vmem:[#allocation11 + $0xf8] sm:$0xff]   ;;  %v2088_v58 = vmov 0.0   ;;  %v1848_v59 = vld [vmem:[#allocation13 + $0x8] sm:$0xff]  }
 0x182   :  { %v546_v62 = vpack.c.bf16 %v542_v57, %v542_v57  ;;  %v544_v4 = vpack.c.bf16 %v540_v56, %v540_v56  ;;  %v1847_v56 = vld [vmem:[#allocation13] sm:$0xff]  }
 0x183   :  { %v545_v63 = vpack.c.bf16 %v541_v60, %v541_v60  ;;  %v547_v1 = vpack.c.bf16 %v543_v61, %v543_v61  ;;  %v1849_v60 = vld [vmem:[#allocation13 + $0x10] sm:$0xff]   ;;  %v1850_v61 = vld [vmem:[#allocation13 + $0x18] sm:$0xff]  }
 0x185   :  { %851 = vmatprep.mubr.bf16.mxu0 %v545_v63  ;;  %891 = vmatprep.mubr.bf16.mxu1 %v547_v1  ;;  %v1852_v63 = vld [vmem:[#allocation13 + $0x28] sm:$0xff]   ;;  %v1853_v1 = vld [vmem:[#allocation13 + $0x30] sm:$0xff]  }
 0x186   :  { %852 = vmatmul.mubr.bf16.vlgmr.msra.gmra.mrb[8].mxu0 %v544_v4  ;;  %892 = vmatmul.mubr.bf16.vlgmr.msra.gmra.mrb[8].mxu1 %v546_v62  ;;  %v1851_v62 = vld [vmem:[#allocation13 + $0x20] sm:$0xff]   ;;  %v1856_v4 = vld [vmem:[#allocation14 + $0x8] sm:$0xff]  }
 0x187   :  { %1634 = vmatpush3.bf16.msra.mxu0 %v1817_v2  ;;  %1656 = vmatpush3.bf16.msra.mxu1 %v1818_v3  ;;  %v1854_v2 = vld [vmem:[#allocation13 + $0x38] sm:$0xff]   ;;  %v1855_v3 = vld [vmem:[#allocation14] sm:$0xff]  }
 0x188   :  { %1635 = vmatprep.subr.bf16.mxu0 %v1819_v5  ;;  %1657 = vmatprep.subr.bf16.mxu1 %v1820_v6  ;;  %v1857_v5 = vld [vmem:[#allocation14 + $0x10] sm:$0xff]   ;;  %v1858_v6 = vld [vmem:[#allocation14 + $0x18] sm:$0xff]  }
 0x189   :  { %v492_v13 = vpop.f32.mrb[4].mxu0  ;;  %v533_v14 = vpop.f32.mrb[4].mxu1 }
 0x18a   :  { %v494_v15 = vpop.f32.mrb[5].mxu0  ;;  %v535_v16 = vpop.f32.mrb[5].mxu1  ;;  %v534_v48 = vadd.f32 %v533_v14, %v380_v42  ;;  %v493_v51 = vadd.f32 %v492_v13, %v372_v45 }
 0x18b   :  { %1636 = vmatpush3.bf16.msra.mxu0 %v1821_v7  ;;  %1658 = vmatpush3.bf16.msra.mxu1 %v1822_v8  ;;  %v495_v19 = vadd.f32 %v494_v15, %v376_v9  ;;  %v496_v20 = vpop.f32.mrb[6].mxu0  ;;  %v536_v21 = vadd.f32 %v535_v16, %v384_v10  ;;  %v537_v22 = vpop.f32.mrb[6].mxu1  ;;  %v1860_v7 = vld [vmem:[#allocation14 + $0x28] sm:$0xff]   ;;  %v1861_v8 = vld [vmem:[#allocation14 + $0x30] sm:$0xff]   ;;  %v1862_v9 = vld [vmem:[#allocation14 + $0x38] sm:$0xff]  }
 0x18c   :  { %1637 = vmatprep.subr.bf16.mxu0 %v1823_v11  ;;  %1659 = vmatprep.subr.bf16.mxu1 %v1824_v12  ;;  %v497_v25 = vpop.f32.mrb[7].mxu0  ;;  %v538_v26 = vpop.f32.mrb[7].mxu1  ;;  %v550_v53 = vmax.f32 %v534_v48, 0.0  ;;  %v548_v37 = vmax.f32 %v493_v51, 0.0  ;;  %v1506_v12 = vld [vmem:[%s2367_s10] ss:$0 sm:$0xff] }
 0x18d   :  { %v549_v27 = vmax.f32 %v495_v19, 0.0  ;;  %v551_v28 = vmax.f32 %v536_v21, 0.0  ;;  %v1588_v48 = vld [vmem:[%s2369_s12] ss:$0 sm:$0xff] }
 0x18e   :  { %v554_v55 = vpack.c.bf16 %v550_v53, %v550_v53  ;;  %v552_v57 = vpack.c.bf16 %v548_v37, %v548_v37 }
 0x18f   :  { %1638 = vmatpush3.bf16.msra.mxu0 %v1825_v17  ;;  %1660 = vmatpush3.bf16.msra.mxu1 %v1826_v18  ;;  %v553_v31 = vpack.c.bf16 %v549_v27, %v549_v27  ;;  %v555_v32 = vpack.c.bf16 %v551_v28, %v551_v28  ;;  %v1539_v27 = vld [vmem:[%s2368_s11] ss:$0 sm:$0xff] }
 0x190   :  { %1639 = vmatprep.subr.bf16.mxu0 %v1827_v23  ;;  %1661 = vmatprep.subr.bf16.mxu1 %v1828_v24 }
 0x191   :  { %1194 = vmatprep.mubr.bf16.mxu0 %v553_v31  ;;  %1234 = vmatprep.mubr.bf16.mxu1 %v555_v32 }
 0x193   :  { %1640 = vmatpush3.bf16.msra.mxu0 %v1829_v29  ;;  %1662 = vmatpush3.bf16.msra.mxu1 %v1830_v30 }
 0x194   :  { %1641 = vmatprep.subr.bf16.mxu0 %v1831_v33  ;;  %1663 = vmatprep.subr.bf16.mxu1 %v1832_v34 }
 0x197   :  { %1642 = vmatpush3.bf16.msra.mxu0 %v1833_v35  ;;  %1664 = vmatpush3.bf16.msra.mxu1 %v1834_v39 }
 0x198   :  { %1643 = vmatprep.subr.bf16.mxu0 %v1835_v40  ;;  %1665 = vmatprep.subr.bf16.mxu1 %v1836_v41 }
 0x19b   :  { %1644 = vmatpush3.bf16.msra.mxu0 %v1837_v43  ;;  %1666 = vmatpush3.bf16.msra.mxu1 %v1838_v44 }
 0x19c   :  { %1645 = vmatprep.subr.bf16.mxu0 %v1839_v46  ;;  %1667 = vmatprep.subr.bf16.mxu1 %v1840_v47 }
 0x19f   :  { %1646 = vmatpush3.bf16.msra.mxu0 %v1841_v49  ;;  %1668 = vmatpush3.bf16.msra.mxu1 %v1842_v50 }
 0x1a0   :  { %1647 = vmatprep.subr.bf16.mxu0 %v1843_v38  ;;  %1669 = vmatprep.subr.bf16.mxu1 %v1844_v52 }
 0x1a3   :  { %1648 = vmatpush3.bf16.msra.mxu0 %v1845_v54  ;;  %1670 = vmatpush3.bf16.msra.mxu1 %v1846_v36 }
 0x1a4   :  { %1715 = vmatprep.subr.bf16.mxu1 %v2088_v58  ;;  %1695 = vmatprep.subr.bf16.mxu0 %v2088_v58 }
 0x1a6   :  { %1195 = vmatmul.mubr.bf16.vlgmr.msra.gmra.mrb[12].mxu0 %v552_v57  ;;  %1235 = vmatmul.mubr.bf16.vlgmr.msra.gmra.mrb[12].mxu1 %v554_v55 }
 0x1a7   :  { %1716 = vmatpush3.bf16.msra.mxu1 %v1847_v56  ;;  %1731 = vmatprep.mubr.msk.bf16.mxu1 %vm2089_vm3, %v2088_v58 }
 0x1a8   :  { %1717 = vmatprep.subr.bf16.mxu1 %v2088_v58  ;;  %1711 = vmatprep.mubr.msk.bf16.mxu0 %vm2089_vm3, %v2088_v58 }
 0x1a9   :  { %1696 = vmatpush3.bf16.msra.mxu0 %v1855_v3 }
 0x1aa   :  { %1697 = vmatprep.subr.bf16.mxu0 %v2088_v58 }
 0x1ab   :  { %1718 = vmatpush3.bf16.msra.mxu1 %v1848_v59 }
 0x1ac   :  { %1719 = vmatprep.subr.bf16.mxu1 %v2088_v58 }
 0x1ad   :  { %1698 = vmatpush3.bf16.msra.mxu0 %v1856_v4 }
 0x1ae   :  { %1699 = vmatprep.subr.bf16.mxu0 %v2088_v58 }
 0x1af   :  { %1720 = vmatpush3.bf16.msra.mxu1 %v1849_v60 }
 0x1b0   :  { %1721 = vmatprep.subr.bf16.mxu1 %v2088_v58 }
 0x1b1   :  { %1700 = vmatpush3.bf16.msra.mxu0 %v1857_v5 }
 0x1b2   :  { %1701 = vmatprep.subr.bf16.mxu0 %v2088_v58 }
 0x1b3   :  { %1722 = vmatpush3.bf16.msra.mxu1 %v1850_v61 }
 0x1b4   :  { %1723 = vmatprep.subr.bf16.mxu1 %v2088_v58 }
 0x1b5   :  { %1702 = vmatpush3.bf16.msra.mxu0 %v1858_v6 }
 0x1b6   :  { %1703 = vmatprep.subr.bf16.mxu0 %v2088_v58 }
 0x1b7   :  { %1724 = vmatpush3.bf16.msra.mxu1 %v1851_v62 }
 0x1b8   :  { %1725 = vmatprep.subr.bf16.mxu1 %v2088_v58 }
 0x1b9   :  { %1704 = vmatpush3.bf16.msra.mxu0 %v1859_v0 }
 0x1ba   :  { %1705 = vmatprep.subr.bf16.mxu0 %v2088_v58 }
 0x1bb   :  { %1726 = vmatpush3.bf16.msra.mxu1 %v1852_v63 }
 0x1bc   :  { %1727 = vmatprep.subr.bf16.mxu1 %v2088_v58 }
 0x1bd   :  { %1706 = vmatpush3.bf16.msra.mxu0 %v1860_v7 }
 0x1be   :  { %1707 = vmatprep.subr.bf16.mxu0 %v2088_v58 }
 0x1bf   :  { %1728 = vmatpush3.bf16.msra.mxu1 %v1853_v1 }
 0x1c0   :  { %1729 = vmatprep.subr.bf16.mxu1 %v2088_v58 }
 0x1c1   :  { %1708 = vmatpush3.bf16.msra.mxu0 %v1861_v8 }
 0x1c2   :  { %1709 = vmatprep.subr.bf16.mxu0 %v2088_v58 }
 0x1c3   :  { %1730 = vmatpush3.bf16.msra.mxu1 %v1854_v2 }
 0x1c5   :  { %1710 = vmatpush3.bf16.msra.mxu0 %v1862_v9 }
 0x259   :  { %v1605_v10 = vpop.f32.mrb[8].mxu0  ;;  %v1627_v11 = vpop.f32.mrb[8].mxu1 }
 0x25a   :  { %v1606_v13 = vpop.f32.mrb[9].mxu0  ;;  %v1628_v14 = vpop.f32.mrb[9].mxu1 }
 0x25b   :  { %v1607_v15 = vadd.f32 %v1606_v13, %v1605_v10  ;;  %v1629_v16 = vadd.f32 %v1628_v14, %v1627_v11  ;;  %v1608_v17 = vpop.f32.mrb[10].mxu0  ;;  %v1630_v18 = vpop.f32.mrb[10].mxu1 }
 0x25c   :  { %v1609_v19 = vpop.f32.mrb[11].mxu0  ;;  %v1631_v20 = vpop.f32.mrb[11].mxu1 }
 0x25d   :  { %v854_v21 = vadd.f32 %v1607_v15, %v1506_v12 }
 0x25f   :  { %v894_v22 = vadd.f32 %v1629_v16, %v854_v21 }
 0x261   :  { %v1242_v23 = vmax.f32 %v894_v22, 0.0 }
 0x263   :  { %v1243_v24 = vpack.c.bf16 %v1242_v23, %v1242_v23 }
 0x265   :  { %1732 = vmatmul.mubr.bf16.vlgmr.msra.gmra.mrb[16].mxu1 %v1243_v24 }
 0x279   :  { %v1649_v25 = vpop.f32.mrb[12].mxu0  ;;  %v1671_v26 = vpop.f32.mrb[12].mxu1 }
 0x27a   :  { %v1650_v28 = vpop.f32.mrb[13].mxu0  ;;  %v1672_v29 = vpop.f32.mrb[13].mxu1 }
 0x27b   :  { %v1651_v30 = vadd.f32 %v1650_v28, %v1649_v25  ;;  %v1673_v31 = vadd.f32 %v1672_v29, %v1671_v26  ;;  %v1652_v32 = vpop.f32.mrb[14].mxu0  ;;  %v1674_v33 = vpop.f32.mrb[14].mxu1 }
 0x27c   :  { %v1653_v34 = vpop.f32.mrb[15].mxu0  ;;  %v1675_v35 = vpop.f32.mrb[15].mxu1 }
 0x27d   :  { %v1197_v39 = vadd.f32 %v1651_v30, %v1539_v27 }
 0x27f   :  { %v1237_v40 = vadd.f32 %v1673_v31, %v1197_v39 }
 0x281   :  { %v1244_v41 = vmax.f32 %v1237_v40, 0.0 }
 0x283   :  { %v1245_v42 = vpack.c.bf16 %v1244_v41, %v1244_v41 }
 0x285   :  { %1712 = vmatmul.mubr.bf16.vlgmr.msra.gmra.mrb[16].mxu0 %v1245_v42 }
 0x338   :  { %v1448_v43 = vpop.f32.mrb[16].mxu1 }
 0x339   :  { %v1733_v44 = vpop.f32.mrb[17].mxu1 }
 0x33a   :  { %v1451_v45 = vpop.f32.mrb[18].mxu1 }
 0x33b   :  { %v1734_v46 = vpop.f32.mrb[19].mxu1 }
 0x358   :  { %v1360_v47 = vpop.f32.mrb[16].mxu0 }
 0x359   :  { %v1449_v49 = vadd.f32 %v1448_v43, %v1360_v47  ;;  %v1713_v50 = vpop.f32.mrb[17].mxu0 }
 0x35a   :  { %v1363_v51 = vpop.f32.mrb[18].mxu0 }
 0x35b   :  { %v1461_v38 = vadd.f32 %v1588_v48, %v1449_v49  ;;  %v1714_v52 = vpop.f32.mrb[19].mxu0 }
 0x35d   :  { %1462 = vst [vmem:[#allocation16] sm:$0x3] %v1461_v38 }
 0x35e   :  { %2050 = shalt.err (!%p2047_p12)
}
 0x35f   :  { %s2051_s12 = scalar_lea.hbm %s2370_s13, 32 }
 0x360   :  { %p2052_p13 = scmp.ne.s32.totalorder %s2370_s13, %s2051_s12  ;;  %p2055_p0 = scmp.lt.u32.totalorder %s2051_s12, %s2370_s13 }
 0x362   :  { %p2057_p1 = pnand %p2055_p0, %p2052_p13 }
 0x364   :  { %2060 = shalt.err (!%p2057_p1)
}
 0x365   :  { %1472 = dma.vmem_to_hbm [thread:$0]  %s1470_s0, 32, %s2370_s13, [#allocation4]  }
 0x366   :  { %2071 = dma.done.wait [#allocation4], 32  }
 0x367   :  { %2072 = vsyncadd [#allocation4], 4294967264 }
 0x368   :  { %1476 = vsyncpa [#allocation3], 1 }
 0x369   :  { %1477 = vsyncpa [#allocation6], 1 }
 0x36a   :  { %1478 = vsyncpa [#allocation9], 1 }
 0x36b   :  { %1479 = vsyncpa [#allocation12], 1 }
 0x36c   :  { %1480 = vsyncpa [#allocation15], 1 }
 0x36d   :  { %1481 = vsyncpa [#allocation4], 1 }

</bundles_post_ra>
